<compile_context>
chip_gen: v6e
topology: v6e:2x2x1
jax: 0.10.0
libtpu: 0.0.40
codegen_flags: <defaults>
</compile_context>

<pallas_src>
import functools

import jax
import jax.numpy as jnp
from jax.experimental import pallas as pl
from jax.experimental.pallas import tpu as pltpu

NEG_SLOPE = 0.01
BN_EPS = 1e-5


def _leaky(x):
    return jnp.where(x >= 0, x, NEG_SLOPE * x)


def _round_up(n, m):
    return ((n + m - 1) // m) * m


# ----------------------------------------------------------------------------
# Kernel
# ----------------------------------------------------------------------------
def _residual_mlp_kernel(x_ref, wx_ref, wx1_ref, wx2_ref, w4b_ref,
                         b1_ref, b2_ref, b3_ref, b4_ref, o_ref, *, hidden):
    """One batch tile of the full 4-layer residual MLP (BN pre-folded)."""
    H = hidden
    cdt = wx_ref.dtype  # MXU operand dtype (bf16 or f32)

    x = x_ref[...]                                                     # (T, Kp)

    # dense1 + partial dense2 (shared LHS x): t0 = x @ [W1' | W2a']
    t0 = jnp.dot(x, wx_ref[...], preferred_element_type=jnp.float32)  # (T, 2H)
    x1 = _leaky(t0[:, :H] + b1_ref[...])                              # f32

    # dense2 (x1 part) + partial dense3 (shared LHS x1)
    t1 = jnp.dot(x1.astype(cdt), wx1_ref[...],
                 preferred_element_type=jnp.float32)                  # (T, 2H)
    x2 = _leaky(t0[:, H:] + t1[:, :H] + b2_ref[...])

    # dense3 (x2 part) + partial dense4 (shared LHS x2)
    t2 = jnp.dot(x2.astype(cdt), wx2_ref[...],
                 preferred_element_type=jnp.float32)                  # (T, H+Op)
    x3 = _leaky(t1[:, H:] + t2[:, :H] + b3_ref[...])

    # dense4 (x3 part)
    out = (t2[:, H:]
           + jnp.dot(x3.astype(cdt), w4b_ref[...],
                     preferred_element_type=jnp.float32)
           + b4_ref[...])
    o_ref[...] = out.astype(o_ref.dtype)


# ----------------------------------------------------------------------------
# Wrapper: BN folding, cat-splitting, N-fusion, padding, BlockSpecs
# ----------------------------------------------------------------------------
def residual_mlp_lite(x, params, *, compute_dtype=jnp.bfloat16, tile_b=256):
    """x: [B, input_size] float32; params: dict from init_params."""
    f32 = jnp.float32
    B, in_size = x.shape
    hidden = params["w1"].shape[1]
    out_size = params["w4"].shape[1]
    H = hidden

    def fold_bn(p):
        gamma, beta, mean, var = p
        scale = gamma / jnp.sqrt(var + BN_EPS)
        shift = beta - mean * scale
        return scale.astype(f32), shift.astype(f32)

    s0, sh0 = fold_bn(params["bn0"])
    s1, sh1 = fold_bn(params["bn1"])
    s2, sh2 = fold_bn(params["bn2"])
    s3, sh3 = fold_bn(params["bn3"])

    w1, b1 = params["w1"], params["b1"]
    w2, b2 = params["w2"], params["b2"]
    w3, b3 = params["w3"], params["b3"]
    w4, b4 = params["w4"], params["b4"]

    # cat-weights split so the kernel never concatenates activations.
    w2a, w2b = w2[:in_size], w2[in_size:]
    w3a, w3b = w3[:hidden], w3[hidden:]
    w4a, w4b = w4[:hidden], w4[hidden:]

    # Fold bn0 into the rows of w1 / w2a (+ bias terms) and bn1..bn3 into the
    # columns of the layer that produces them.
    W1p = (s0[:, None] * w1) * s1[None, :]
    b1p = (sh0 @ w1 + b1) * s1 + sh1

    W2ap = (s0[:, None] * w2a) * s2[None, :]
    W2bp = w2b * s2[None, :]
    b2p = (sh0 @ w2a + b2) * s2 + sh2

    W3ap = w3a * s3[None, :]
    W3bp = w3b * s3[None, :]
    b3p = b3 * s3 + sh3

    # --- pad to MXU / lane friendly sizes -----------------------------------
    K_pad = _round_up(in_size, 128)      # 130 -> 256
    O_pad = _round_up(out_size, 128)     # 5   -> 128 (lane-dense output store)

    def pad_rows(w, rows):
        return jnp.pad(w, ((0, rows - w.shape[0]), (0, 0)))

    def pad_cols(w, cols):
        return jnp.pad(w, ((0, 0), (0, cols - w.shape[1])))

    # Fuse shared-LHS matmuls along N (>=128-wide MXU pushes).
    Wx = jnp.concatenate([pad_rows(W1p, K_pad), pad_rows(W2ap, K_pad)], 1)   # (Kp, 2H)
    Wx1 = jnp.concatenate([W2bp, W3ap], 1)                                    # (H, 2H)
    Wx2 = jnp.concatenate([W3bp, pad_cols(w4a, O_pad)], 1)                    # (H, H+Op)
    W4b = pad_cols(w4b, O_pad)                                                # (H, Op)

    cdt = compute_dtype
    Wx, Wx1, Wx2, W4b = (w.astype(cdt) for w in (Wx, Wx1, Wx2, W4b))

    b1p = b1p[None, :].astype(f32)
    b2p = b2p[None, :].astype(f32)
    b3p = b3p[None, :].astype(f32)
    b4p = jnp.pad(b4, (0, O_pad - out_size))[None, :].astype(f32)

    # --- batch tiling --------------------------------------------------------
    TILE_B = min(tile_b, _round_up(B, 8))
    B_pad = _round_up(B, TILE_B)
    x_p = jnp.pad(x.astype(f32), ((0, B_pad - B), (0, K_pad - in_size))).astype(cdt)

    grid = (B_pad // TILE_B,)

    def const_spec(arr):
        # Weights/biases: whole array, constant block index -> VMEM-resident.
        return pl.BlockSpec(arr.shape, lambda i: (0,) * arr.ndim)

    kernel = functools.partial(_residual_mlp_kernel, hidden=H)

    flops = 2 * B_pad * (K_pad * 2 * H + H * 2 * H + H * (H + O_pad) + H * O_pad)
    bytes_accessed = (
        x_p.size * x_p.dtype.itemsize
        + sum(w.size * w.dtype.itemsize for w in (Wx, Wx1, Wx2, W4b))
        + sum(b.size * 4 for b in (b1p, b2p, b3p, b4p))
        + B_pad * O_pad * 4)

    out = pl.pallas_call(
        kernel,
        out_shape=jax.ShapeDtypeStruct((B_pad, O_pad), jnp.float32),
        grid=grid,
        in_specs=[
            pl.BlockSpec((TILE_B, K_pad), lambda i: (i, 0)),   # x tile (pipelined)
            const_spec(Wx), const_spec(Wx1), const_spec(Wx2), const_spec(W4b),
            const_spec(b1p), const_spec(b2p), const_spec(b3p), const_spec(b4p),
        ],
        out_specs=pl.BlockSpec((TILE_B, O_pad), lambda i: (i, 0)),
        compiler_params=pltpu.CompilerParams(
            dimension_semantics=("parallel",),          # megacore on v7x
            vmem_limit_bytes=32 * 1024 * 1024,
        ),
        cost_estimate=pl.CostEstimate(
            flops=flops, transcendentals=0, bytes_accessed=bytes_accessed),
    )(x_p, Wx, Wx1, Wx2, W4b, b1p, b2p, b3p, b4p)

    return out[:B, :out_size]


# ----------------------------------------------------------------------------
# Synthetic params + pure-JAX reference
# ----------------------------------------------------------------------------
def init_params(key, input_size, hidden_size, output_size):
    ks = jax.random.split(key, 12)

    def lin(kw, kb, fan_in, fan_out):
        bound = 1.0 / jnp.sqrt(fan_in)
        w = jax.random.uniform(kw, (fan_in, fan_out), jnp.float32, -bound, bound)
        b = jax.random.uniform(kb, (fan_out,), jnp.float32, -bound, bound)
        return w, b

    def bn(k, c):
        kg, kb, km, kv = jax.random.split(k, 4)
        gamma = 1.0 + 0.1 * jax.random.normal(kg, (c,), jnp.float32)
        beta = 0.1 * jax.random.normal(kb, (c,), jnp.float32)
        mean = 0.1 * jax.random.normal(km, (c,), jnp.float32)
        var = jnp.abs(1.0 + 0.1 * jax.random.normal(kv, (c,), jnp.float32))
        return gamma, beta, mean, var

    w1, b1 = lin(ks[0], ks[1], input_size, hidden_size)
    w2, b2 = lin(ks[2], ks[3], hidden_size + input_size, hidden_size)
    w3, b3 = lin(ks[4], ks[5], hidden_size + hidden_size, hidden_size)
    w4, b4 = lin(ks[6], ks[7], hidden_size + hidden_size, output_size)

    return {
        "bn0": bn(ks[8], input_size),
        "w1": w1, "b1": b1, "bn1": bn(ks[9], hidden_size),
        "w2": w2, "b2": b2, "bn2": bn(ks[10], hidden_size),
        "w3": w3, "b3": b3, "bn3": bn(ks[11], hidden_size),
        "w4": w4, "b4": b4,
    }


def reference_forward(x, params):
    """Pure-JAX reference of the torch forward (eval mode)."""
    def bn_apply(v, p):
        gamma, beta, mean, var = p
        return (v - mean) / jnp.sqrt(var + BN_EPS) * gamma + beta

    x = bn_apply(x, params["bn0"])
    x1 = _leaky(bn_apply(x @ params["w1"] + params["b1"], params["bn1"]))
    c = jnp.concatenate([x, x1], axis=1)
    x2 = _leaky(bn_apply(c @ params["w2"] + params["b2"], params["bn2"]))
    c = jnp.concatenate([x1, x2], axis=1)
    x3 = _leaky(bn_apply(c @ params["w3"] + params["b3"], params["bn3"]))
    c = jnp.concatenate([x2, x3], axis=1)
    return c @ params["w4"] + params["b4"]


if __name__ == "__main__":
    # Module-consistent small shapes: 130 features, 5 targets, reduced
    # (lane-aligned) hidden size for the demo.
    INPUT_SIZE, HIDDEN_SIZE, OUTPUT_SIZE, BATCH = 130, 128, 5, 64

    key = jax.random.PRNGKey(0)
    kx, kp = jax.random.split(key)
    x = jax.random.normal(kx, (BATCH, INPUT_SIZE), jnp.float32)
    params = init_params(kp, INPUT_SIZE, HIDDEN_SIZE, OUTPUT_SIZE)

    ref = reference_forward(x, params)

    # f32-operand path: tight numerical check.
    out_f32 = jax.block_until_ready(
        residual_mlp_lite(x, params, compute_dtype=jnp.float32))
    assert out_f32.shape == (BATCH, OUTPUT_SIZE)
    assert jnp.allclose(out_f32, ref, atol=1e-4, rtol=1e-4), "f32 mismatch vs reference"

    # bf16-operand path (f32 MXU accumulation): loose check.
    out_bf16 = jax.block_until_ready(
        residual_mlp_lite(x, params, compute_dtype=jnp.bfloat16))
    assert out_bf16.shape == (BATCH, OUTPUT_SIZE)
    max_err = float(jnp.max(jnp.abs(out_bf16 - ref)))
    assert max_err < 0.15, f"bf16 mismatch vs reference (max abs err {max_err})"

    print("KERNEL_OK")
</pallas_src>

<mosaic_0001>
module attributes {stable_mosaic.version = 11 : i64} {
  func.func @_residual_mlp_kernel(%arg0: i32, %arg1: memref<64x256xf32, #tpu.memory_space<vmem>>, %arg2: memref<256x256xf32, #tpu.memory_space<vmem>>, %arg3: memref<128x256xf32, #tpu.memory_space<vmem>>, %arg4: memref<128x256xf32, #tpu.memory_space<vmem>>, %arg5: memref<128x128xf32, #tpu.memory_space<vmem>>, %arg6: memref<1x128xf32, #tpu.memory_space<vmem>>, %arg7: memref<1x128xf32, #tpu.memory_space<vmem>>, %arg8: memref<1x128xf32, #tpu.memory_space<vmem>>, %arg9: memref<1x128xf32, #tpu.memory_space<vmem>>, %arg10: memref<64x128xf32, #tpu.memory_space<vmem>>) attributes {dimension_semantics = [#tpu.dimension_semantics<parallel>], iteration_bounds = array<i64: 1>, scalar_prefetch = 0 : i64, scratch_operands = 0 : i64, tpu.core_type = #tpu.core_type<tc>, window_params = [{transform_indices = @transform_0, window_bounds = array<i64: 64, 256>}, {pipeline_mode = #tpu.pipeline_mode<synchronous>, transform_indices = @transform_1, window_bounds = array<i64: 256, 256>}, {pipeline_mode = #tpu.pipeline_mode<synchronous>, transform_indices = @transform_2, window_bounds = array<i64: 128, 256>}, {pipeline_mode = #tpu.pipeline_mode<synchronous>, transform_indices = @transform_3, window_bounds = array<i64: 128, 256>}, {pipeline_mode = #tpu.pipeline_mode<synchronous>, transform_indices = @transform_4, window_bounds = array<i64: 128, 128>}, {pipeline_mode = #tpu.pipeline_mode<synchronous>, transform_indices = @transform_5, window_bounds = array<i64: 1, 128>}, {pipeline_mode = #tpu.pipeline_mode<synchronous>, transform_indices = @transform_6, window_bounds = array<i64: 1, 128>}, {pipeline_mode = #tpu.pipeline_mode<synchronous>, transform_indices = @transform_7, window_bounds = array<i64: 1, 128>}, {pipeline_mode = #tpu.pipeline_mode<synchronous>, transform_indices = @transform_8, window_bounds = array<i64: 1, 128>}, {transform_indices = @transform_9, window_bounds = array<i64: 64, 128>}]} {
    %c0 = arith.constant 0 : index
    %c0_0 = arith.constant 0 : index
    %0 = vector.load %arg1[%c0, %c0_0] : memref<64x256xf32, #tpu.memory_space<vmem>>, vector<64x256xf32>
    %c0_1 = arith.constant 0 : index
    %c0_2 = arith.constant 0 : index
    %1 = vector.load %arg2[%c0_1, %c0_2] : memref<256x256xf32, #tpu.memory_space<vmem>>, vector<256x256xf32>
    %cst = arith.constant dense<0.000000e+00> : vector<64x256xf32>
    %2 = tpu.matmul %0, %1, %cst {dimension_numbers = #tpu.dot_dimension_numbers<[1], [0], [0], [1], [0, 0, 1, 1], [], []>} : vector<64x256xf32>, vector<256x256xf32>, vector<64x256xf32> -> vector<64x256xf32>
    %3 = vector.extract_strided_slice %2 {offsets = [0, 0], sizes = [64, 128], strides = [1, 1]} : vector<64x256xf32> to vector<64x128xf32>
    %c0_3 = arith.constant 0 : index
    %c0_4 = arith.constant 0 : index
    %4 = vector.load %arg6[%c0_3, %c0_4] : memref<1x128xf32, #tpu.memory_space<vmem>>, vector<1x128xf32>
    %5 = vector.broadcast %4 : vector<1x128xf32> to vector<64x128xf32>
    %6 = arith.addf %3, %5 : vector<64x128xf32>
    %cst_5 = arith.constant 0.000000e+00 : f32
    %7 = vector.broadcast %cst_5 : f32 to vector<64x128xf32>
    %8 = arith.cmpf oge, %6, %7 : vector<64x128xf32>
    %cst_6 = arith.constant 0.00999999977 : f32
    %9 = vector.broadcast %cst_6 : f32 to vector<64x128xf32>
    %10 = arith.mulf %9, %6 : vector<64x128xf32>
    %11 = arith.select %8, %6, %10 : vector<64x128xi1>, vector<64x128xf32>
    %c0_7 = arith.constant 0 : index
    %c0_8 = arith.constant 0 : index
    %12 = vector.load %arg3[%c0_7, %c0_8] : memref<128x256xf32, #tpu.memory_space<vmem>>, vector<128x256xf32>
    %cst_9 = arith.constant dense<0.000000e+00> : vector<64x256xf32>
    %13 = tpu.matmul %11, %12, %cst_9 {dimension_numbers = #tpu.dot_dimension_numbers<[1], [0], [0], [1], [0, 0, 1, 1], [], []>} : vector<64x128xf32>, vector<128x256xf32>, vector<64x256xf32> -> vector<64x256xf32>
    %14 = vector.extract_strided_slice %2 {offsets = [0, 128], sizes = [64, 128], strides = [1, 1]} : vector<64x256xf32> to vector<64x128xf32>
    %15 = vector.extract_strided_slice %13 {offsets = [0, 0], sizes = [64, 128], strides = [1, 1]} : vector<64x256xf32> to vector<64x128xf32>
    %16 = arith.addf %14, %15 : vector<64x128xf32>
    %c0_10 = arith.constant 0 : index
    %c0_11 = arith.constant 0 : index
    %17 = vector.load %arg7[%c0_10, %c0_11] : memref<1x128xf32, #tpu.memory_space<vmem>>, vector<1x128xf32>
    %18 = vector.broadcast %17 : vector<1x128xf32> to vector<64x128xf32>
    %19 = arith.addf %16, %18 : vector<64x128xf32>
    %cst_12 = arith.constant 0.000000e+00 : f32
    %20 = vector.broadcast %cst_12 : f32 to vector<64x128xf32>
    %21 = arith.cmpf oge, %19, %20 : vector<64x128xf32>
    %cst_13 = arith.constant 0.00999999977 : f32
    %22 = vector.broadcast %cst_13 : f32 to vector<64x128xf32>
    %23 = arith.mulf %22, %19 : vector<64x128xf32>
    %24 = arith.select %21, %19, %23 : vector<64x128xi1>, vector<64x128xf32>
    %c0_14 = arith.constant 0 : index
    %c0_15 = arith.constant 0 : index
    %25 = vector.load %arg4[%c0_14, %c0_15] : memref<128x256xf32, #tpu.memory_space<vmem>>, vector<128x256xf32>
    %cst_16 = arith.constant dense<0.000000e+00> : vector<64x256xf32>
    %26 = tpu.matmul %24, %25, %cst_16 {dimension_numbers = #tpu.dot_dimension_numbers<[1], [0], [0], [1], [0, 0, 1, 1], [], []>} : vector<64x128xf32>, vector<128x256xf32>, vector<64x256xf32> -> vector<64x256xf32>
    %27 = vector.extract_strided_slice %13 {offsets = [0, 128], sizes = [64, 128], strides = [1, 1]} : vector<64x256xf32> to vector<64x128xf32>
    %28 = vector.extract_strided_slice %26 {offsets = [0, 0], sizes = [64, 128], strides = [1, 1]} : vector<64x256xf32> to vector<64x128xf32>
    %29 = arith.addf %27, %28 : vector<64x128xf32>
    %c0_17 = arith.constant 0 : index
    %c0_18 = arith.constant 0 : index
    %30 = vector.load %arg8[%c0_17, %c0_18] : memref<1x128xf32, #tpu.memory_space<vmem>>, vector<1x128xf32>
    %31 = vector.broadcast %30 : vector<1x128xf32> to vector<64x128xf32>
    %32 = arith.addf %29, %31 : vector<64x128xf32>
    %cst_19 = arith.constant 0.000000e+00 : f32
    %33 = vector.broadcast %cst_19 : f32 to vector<64x128xf32>
    %34 = arith.cmpf oge, %32, %33 : vector<64x128xf32>
    %cst_20 = arith.constant 0.00999999977 : f32
    %35 = vector.broadcast %cst_20 : f32 to vector<64x128xf32>
    %36 = arith.mulf %35, %32 : vector<64x128xf32>
    %37 = arith.select %34, %32, %36 : vector<64x128xi1>, vector<64x128xf32>
    %38 = vector.extract_strided_slice %26 {offsets = [0, 128], sizes = [64, 128], strides = [1, 1]} : vector<64x256xf32> to vector<64x128xf32>
    %c0_21 = arith.constant 0 : index
    %c0_22 = arith.constant 0 : index
    %39 = vector.load %arg5[%c0_21, %c0_22] : memref<128x128xf32, #tpu.memory_space<vmem>>, vector<128x128xf32>
    %cst_23 = arith.constant dense<0.000000e+00> : vector<64x128xf32>
    %40 = tpu.matmul %37, %39, %cst_23 {dimension_numbers = #tpu.dot_dimension_numbers<[1], [0], [0], [1], [0, 0, 1, 1], [], []>} : vector<64x128xf32>, vector<128x128xf32>, vector<64x128xf32> -> vector<64x128xf32>
    %41 = arith.addf %38, %40 : vector<64x128xf32>
    %c0_24 = arith.constant 0 : index
    %c0_25 = arith.constant 0 : index
    %42 = vector.load %arg9[%c0_24, %c0_25] : memref<1x128xf32, #tpu.memory_space<vmem>>, vector<1x128xf32>
    %43 = vector.broadcast %42 : vector<1x128xf32> to vector<64x128xf32>
    %44 = arith.addf %41, %43 : vector<64x128xf32>
    %c0_26 = arith.constant 0 : index
    %c0_27 = arith.constant 0 : index
    %45 = vector.load %arg10[%c0_26, %c0_27] : memref<64x128xf32, #tpu.memory_space<vmem>>, vector<64x128xf32>
    tpu.vector_store %arg10[%c0_26, %c0_27], %44 {strides = array<i32>} : memref<64x128xf32, #tpu.memory_space<vmem>>, vector<64x128xf32>,
    return
  }
  func.func @transform_0(%arg0: i32) -> (i32, i32) {
    %c0_i32 = arith.constant 0 : i32
    %c0_i32_0 = arith.constant 0 : i32
    return %arg0, %c0_i32 : i32, i32
  }
  func.func @transform_1(%arg0: i32) -> (i32, i32) {
    %c0_i32 = arith.constant 0 : i32
    %c0_i32_0 = arith.constant 0 : i32
    %c0_i32_1 = arith.constant 0 : i32
    return %c0_i32, %c0_i32_0 : i32, i32
  }
  func.func @transform_2(%arg0: i32) -> (i32, i32) {
    %c0_i32 = arith.constant 0 : i32
    %c0_i32_0 = arith.constant 0 : i32
    %c0_i32_1 = arith.constant 0 : i32
    return %c0_i32, %c0_i32_0 : i32, i32
  }
  func.func @transform_3(%arg0: i32) -> (i32, i32) {
    %c0_i32 = arith.constant 0 : i32
    %c0_i32_0 = arith.constant 0 : i32
    %c0_i32_1 = arith.constant 0 : i32
    return %c0_i32, %c0_i32_0 : i32, i32
  }
  func.func @transform_4(%arg0: i32) -> (i32, i32) {
    %c0_i32 = arith.constant 0 : i32
    %c0_i32_0 = arith.constant 0 : i32
    %c0_i32_1 = arith.constant 0 : i32
    return %c0_i32, %c0_i32_0 : i32, i32
  }
  func.func @transform_5(%arg0: i32) -> (i32, i32) {
    %c0_i32 = arith.constant 0 : i32
    %c0_i32_0 = arith.constant 0 : i32
    %c0_i32_1 = arith.constant 0 : i32
    return %c0_i32, %c0_i32_0 : i32, i32
  }
  func.func @transform_6(%arg0: i32) -> (i32, i32) {
    %c0_i32 = arith.constant 0 : i32
    %c0_i32_0 = arith.constant 0 : i32
    %c0_i32_1 = arith.constant 0 : i32
    return %c0_i32, %c0_i32_0 : i32, i32
  }
  func.func @transform_7(%arg0: i32) -> (i32, i32) {
    %c0_i32 = arith.constant 0 : i32
    %c0_i32_0 = arith.constant 0 : i32
    %c0_i32_1 = arith.constant 0 : i32
    return %c0_i32, %c0_i32_0 : i32, i32
  }
  func.func @transform_8(%arg0: i32) -> (i32, i32) {
    %c0_i32 = arith.constant 0 : i32
    %c0_i32_0 = arith.constant 0 : i32
    %c0_i32_1 = arith.constant 0 : i32
    return %c0_i32, %c0_i32_0 : i32, i32
  }
  func.func @transform_9(%arg0: i32) -> (i32, i32) {
    %c0_i32 = arith.constant 0 : i32
    %c0_i32_0 = arith.constant 0 : i32
    return %arg0, %c0_i32 : i32, i32
  }
}

</mosaic_0001>

<bundles_post_ra>
// kernel: tpu_custom_call.1
= control target key start
LH: loop header
LB: loop body
LE: loop exit
PB: predicated region body
PF: predicated region fallthrough
CT: control target
= control target key end

     0   :  { %14 = vsyncpa [#allocation3], 0  ;;  %s1357_s0 = inlined_call_operand.hbm [shape: f32[64,256], index: 0, kind: input, shape index: {}]   ;;  %s1358_s1 = inlined_call_operand.hbm [shape: f32[256,256], index: 1, kind: input, shape index: {}]   ;;  %s1359_s2 = inlined_call_operand.hbm [shape: f32[128,256], index: 2, kind: input, shape index: {}]   ;;  %s1360_s3 = inlined_call_operand.hbm [shape: f32[128,256], index: 3, kind: input, shape index: {}]   ;;  %s1361_s4 = inlined_call_operand.hbm [shape: f32[128,128], index: 4, kind: input, shape index: {}]   ;;  %s1362_s5 = inlined_call_operand.vmem [shape: f32[1,128], index: 5, kind: input, shape index: {}]   ;;  %s1363_s6 = inlined_call_operand.vmem [shape: f32[1,128], index: 6, kind: input, shape index: {}]   ;;  %s1364_s7 = inlined_call_operand.vmem [shape: f32[1,128], index: 7, kind: input, shape index: {}]   ;;  %s1365_s8 = inlined_call_operand.vmem [shape: f32[1,128], index: 8, kind: input, shape index: {}]   ;;  %s1366_s9 = inlined_call_operand.hbm [shape: f32[64,128], index: 9, kind: output, shape index: {}]  }
   0x1   :  { %15 = vsyncpa [#allocation6], 0 }
   0x2   :  { %16 = vsyncpa [#allocation9], 0 }
   0x3   :  { %17 = vsyncpa [#allocation4], 0  ;;  %s1131_s30 = smov [#allocation5]   ;;  %s1132_s11 = smov [#allocation8]  }
   0x4   :  { %s35_s10 = sshll.u32 %s1131_s30, 4  ;;  %s59_s12 = sshll.u32 %s1132_s11, 4  ;;  %s36_s10 = int_to_ptr.vmem [resolvable:$true] %s35_s10  ;;  %s60_s12 = int_to_ptr.vmem [resolvable:$true] %s59_s12 }
   0x5   :  { %s1011_s13 = scalar_lea.vmem %s36_s10, 8192  ;;  %p1016_p1 = scmp.lt.s32.totalorder %s36_s10, %s36_s10 }
   0x6   :  { %p1012_p0 = scmp.ne.s32.totalorder %s36_s10, %s1011_s13  ;;  %p1017_p2 = scmp.lt.s32.totalorder %s1011_s13, %s1011_s13 }
   0x8   :  { %p1018_p3 = por %p1017_p2, %p1016_p1 }
   0xa   :  { %p1019_p4 = pnand %p1018_p3, %p1012_p0 }
   0xc   :  { %1022 = shalt.err (!%p1019_p4)
}
   0xd   :  { %s1133_s14 = smov 256   ;;  %s1134_s15 = smov 16  }
   0xe   :  { %41 = dma.hbm_to_vmem [thread:$0]  %s1358_s1, 8192, %s36_s10, [#allocation6], %s1133_s14, %s1133_s14, %s1134_s15  }
   0xf   :  { %s1031_s18 = scalar_lea.vmem %s60_s12, 4096  ;;  %p1036_p6 = scmp.lt.s32.totalorder %s60_s12, %s60_s12 }
  0x10   :  { %p1032_p5 = scmp.ne.s32.totalorder %s60_s12, %s1031_s18  ;;  %p1037_p7 = scmp.lt.s32.totalorder %s1031_s18, %s1031_s18 }
  0x12   :  { %p1038_p8 = por %p1037_p7, %p1036_p6 }
  0x14   :  { %p1039_p9 = pnand %p1038_p8, %p1032_p5 }
  0x16   :  { %1042 = shalt.err (!%p1039_p9)
}
  0x17   :  { %65 = dma.hbm_to_vmem [thread:$0]  %s1360_s3, 4096, %s60_s12, [#allocation9], %s1133_s14, %s1133_s14, %s1134_s15  }
  0x18   :  { %s1135_s21 = smov [#allocation2]   ;;  %s1136_s23 = smov [#allocation7]  }
  0x19   :  { %s23_s22 = sshll.u32 %s1135_s21, 4  ;;  %s47_s24 = sshll.u32 %s1136_s23, 4  ;;  %s24_s22 = int_to_ptr.vmem [resolvable:$true] %s23_s22  ;;  %s48_s24 = int_to_ptr.vmem [resolvable:$true] %s47_s24 }
  0x1a   :  { %s1051_s1 = scalar_lea.vmem %s24_s22, 2048  ;;  %p1056_p11 = scmp.lt.s32.totalorder %s24_s22, %s24_s22 }
  0x1b   :  { %p1052_p10 = scmp.ne.s32.totalorder %s24_s22, %s1051_s1  ;;  %p1057_p12 = scmp.lt.s32.totalorder %s1051_s1, %s1051_s1 }
  0x1d   :  { %p1058_p13 = por %p1057_p12, %p1056_p11 }
  0x1f   :  { %p1059_p0 = pnand %p1058_p13, %p1052_p10 }
  0x21   :  { %1062 = shalt.err (!%p1059_p0)
}
  0x22   :  { %29 = dma.hbm_to_vmem [thread:$0]  %s1357_s0, 2048, %s24_s22, [#allocation3], %s1133_s14, %s1133_s14, %s1134_s15  }
  0x23   :  { %s1071_s3 = scalar_lea.vmem %s48_s24, 4096  ;;  %p1076_p2 = scmp.lt.s32.totalorder %s48_s24, %s48_s24 }
  0x24   :  { %p1072_p1 = scmp.ne.s32.totalorder %s48_s24, %s1071_s3  ;;  %p1077_p3 = scmp.lt.s32.totalorder %s1071_s3, %s1071_s3 }
  0x26   :  { %p1078_p4 = por %p1077_p3, %p1076_p2 }
  0x28   :  { %p1079_p5 = pnand %p1078_p4, %p1072_p1 }
  0x2a   :  { %1082 = shalt.err (!%p1079_p5)
}
  0x2b   :  { %53 = dma.hbm_to_vmem [thread:$0]  %s1359_s2, 4096, %s48_s24, [#allocation6], %s1133_s14, %s1133_s14, %s1134_s15  }
  0x2c   :  { %s1137_s29 = smov [#allocation10]  }
  0x2d   :  { %s71_s30 = sshll.u32 %s1137_s29, 4  ;;  %s72_s30 = int_to_ptr.vmem [resolvable:$true] %s71_s30 }
  0x2e   :  { %s1091_s10 = scalar_lea.vmem %s72_s30, 2048  ;;  %p1096_p7 = scmp.lt.s32.totalorder %s72_s30, %s72_s30 }
  0x2f   :  { %p1092_p6 = scmp.ne.s32.totalorder %s72_s30, %s1091_s10  ;;  %p1097_p8 = scmp.lt.s32.totalorder %s1091_s10, %s1091_s10 }
  0x31   :  { %p1098_p9 = por %p1097_p8, %p1096_p7 }
  0x33   :  { %p1099_p10 = pnand %p1098_p9, %p1092_p6 }
  0x35   :  { %1102 = shalt.err (!%p1099_p10)
}
  0x36   :  { %s1138_s0 = smov 128   ;;  %s1139_s11 = smov 8  }
  0x37   :  { %77 = dma.hbm_to_vmem [thread:$0]  %s1361_s4, 2048, %s72_s30, [#allocation9], %s1138_s0, %s1138_s0, %s1139_s11  }
  0x38   :  { %1123 = dma.done.wait [#allocation3], 2048  }
  0x39   :  { %1124 = vsyncadd [#allocation3], 4294965248 }
  0x3a   :  { %1125 = dma.done.wait [#allocation6], 12288  }
  0x3b   :  { %1126 = vsyncadd [#allocation6], 4294955008 }
  0x3c   :  { %1127 = dma.done.wait [#allocation9], 6144  }
  0x3d   :  { %1128 = vsyncadd [#allocation9], 4294961152  ;;  %v148_v0 = vld [vmem:[#allocation5 + $0xf8] sm:$0xff]  ;;  %v147_v1 = vld [vmem:[#allocation5 + $0xf0] sm:$0xff] }
  0x3e   :  { %v146_v2 = vld [vmem:[#allocation5 + $0xe8] sm:$0xff]  ;;  %181 = vmatprep.subr.mxu0 %v148_v0  ;;  %v145_v3 = vld [vmem:[#allocation5 + $0xe0] sm:$0xff]  ;;  %v144_v4 = vld [vmem:[#allocation5 + $0xd8] sm:$0xff] }
  0x3f   :  { %182 = vmatpush1.msra.mxu0 %v147_v1  ;;  %v143_v5 = vld [vmem:[#allocation5 + $0xd0] sm:$0xff]  ;;  %v142_v6 = vld [vmem:[#allocation5 + $0xc8] sm:$0xff]  ;;  %v141_v7 = vld [vmem:[#allocation5 + $0xc0] sm:$0xff] }
  0x40   :  { %183 = vmatprep.subr.mxu0 %v146_v2  ;;  %v140_v8 = vld [vmem:[#allocation5 + $0xb8] sm:$0xff]  ;;  %v139_v9 = vld [vmem:[#allocation5 + $0xb0] sm:$0xff]  ;;  %v138_v10 = vld [vmem:[#allocation5 + $0xa8] sm:$0xff] }
  0x41   :  { %184 = vmatpush1.msra.mxu0 %v145_v3  ;;  %v137_v11 = vld [vmem:[#allocation5 + $0xa0] sm:$0xff]  ;;  %v136_v12 = vld [vmem:[#allocation5 + $0x98] sm:$0xff]  ;;  %v135_v13 = vld [vmem:[#allocation5 + $0x90] sm:$0xff] }
  0x42   :  { %185 = vmatprep.subr.mxu0 %v144_v4  ;;  %v134_v14 = vld [vmem:[#allocation5 + $0x88] sm:$0xff]  ;;  %v133_v15 = vld [vmem:[#allocation5 + $0x80] sm:$0xff]  ;;  %v132_v16 = vld [vmem:[#allocation5 + $0x78] sm:$0xff] }
  0x43   :  { %186 = vmatpush1.msra.mxu0 %v143_v5  ;;  %v131_v17 = vld [vmem:[#allocation5 + $0x70] sm:$0xff]  ;;  %v130_v18 = vld [vmem:[#allocation5 + $0x68] sm:$0xff]  ;;  %v129_v19 = vld [vmem:[#allocation5 + $0x60] sm:$0xff] }
  0x44   :  { %187 = vmatprep.subr.mxu0 %v142_v6  ;;  %v128_v20 = vld [vmem:[#allocation5 + $0x58] sm:$0xff]  ;;  %v127_v21 = vld [vmem:[#allocation5 + $0x50] sm:$0xff]  ;;  %v126_v22 = vld [vmem:[#allocation5 + $0x48] sm:$0xff] }
  0x45   :  { %188 = vmatpush1.msra.mxu0 %v141_v7  ;;  %v125_v23 = vld [vmem:[#allocation5 + $0x40] sm:$0xff]  ;;  %v102_v24 = vld [vmem:[#allocation2 + $0x8] sm:$0xff]  ;;  %v124_v25 = vld [vmem:[#allocation5 + $0x38] sm:$0xff] }
  0x46   :  { %189 = vmatprep.subr.mxu0 %v140_v8  ;;  %245 = vmatprep.mubr.f32.mxu0 %v102_v24  ;;  %v123_v26 = vld [vmem:[#allocation5 + $0x30] sm:$0xff]  ;;  %v122_v27 = vld [vmem:[#allocation5 + $0x28] sm:$0xff]  ;;  %v121_v28 = vld [vmem:[#allocation5 + $0x20] sm:$0xff] }
  0x47   :  { %190 = vmatpush1.msra.mxu0 %v139_v9  ;;  %v120_v29 = vld [vmem:[#allocation5 + $0x18] sm:$0xff]  ;;  %v119_v30 = vld [vmem:[#allocation5 + $0x10] sm:$0xff]  ;;  %v362_v33 = vld [vmem:[#allocation7 + $0xe8] sm:$0xff] }
  0x48   :  { %191 = vmatprep.subr.mxu0 %v138_v10  ;;  %v364_v31 = vld [vmem:[#allocation7 + $0xf8] sm:$0xff]  ;;  %v363_v32 = vld [vmem:[#allocation7 + $0xf0] sm:$0xff]  ;;  %v361_v34 = vld [vmem:[#allocation7 + $0xe0] sm:$0xff] }
  0x49   :  { %192 = vmatpush1.msra.mxu0 %v137_v11  ;;  %365 = vmatprep.subr.mxu1 %v364_v31  ;;  %v118_v35 = vld [vmem:[#allocation5 + $0x8] sm:$0xff]  ;;  %v360_v36 = vld [vmem:[#allocation7 + $0xd8] sm:$0xff]  ;;  %v117_v37 = vld [vmem:[#allocation5] sm:$0xff] }
  0x4a   :  { %193 = vmatprep.subr.mxu0 %v136_v12  ;;  %366 = vmatpush1.msra.mxu1 %v363_v32  ;;  %v359_v38 = vld [vmem:[#allocation7 + $0xd0] sm:$0xff]  ;;  %v180_v39 = vld [vmem:[#allocation5 + $0x1f8] sm:$0xff]  ;;  %v358_v40 = vld [vmem:[#allocation7 + $0xc8] sm:$0xff] }
  0x4b   :  { %194 = vmatpush1.msra.mxu0 %v135_v13  ;;  %367 = vmatprep.subr.mxu1 %v362_v33  ;;  %v179_v41 = vld [vmem:[#allocation5 + $0x1f0] sm:$0xff]  ;;  %v357_v42 = vld [vmem:[#allocation7 + $0xc0] sm:$0xff]  ;;  %v178_v43 = vld [vmem:[#allocation5 + $0x1e8] sm:$0xff] }
  0x4c   :  { %195 = vmatprep.subr.mxu0 %v134_v14  ;;  %368 = vmatpush1.msra.mxu1 %v361_v34  ;;  %v356_v44 = vld [vmem:[#allocation7 + $0xb8] sm:$0xff]  ;;  %v177_v45 = vld [vmem:[#allocation5 + $0x1e0] sm:$0xff]  ;;  %v355_v46 = vld [vmem:[#allocation7 + $0xb0] sm:$0xff] }
  0x4d   :  { %196 = vmatpush1.msra.mxu0 %v133_v15  ;;  %369 = vmatprep.subr.mxu1 %v360_v36  ;;  %v176_v47 = vld [vmem:[#allocation5 + $0x1d8] sm:$0xff]  ;;  %v354_v48 = vld [vmem:[#allocation7 + $0xa8] sm:$0xff]  ;;  %v175_v49 = vld [vmem:[#allocation5 + $0x1d0] sm:$0xff] }
  0x4e   :  { %197 = vmatprep.subr.mxu0 %v132_v16  ;;  %370 = vmatpush1.msra.mxu1 %v359_v38  ;;  %v353_v50 = vld [vmem:[#allocation7 + $0xa0] sm:$0xff]  ;;  %v174_v51 = vld [vmem:[#allocation5 + $0x1c8] sm:$0xff]  ;;  %v352_v52 = vld [vmem:[#allocation7 + $0x98] sm:$0xff] }
  0x4f   :  { %198 = vmatpush1.msra.mxu0 %v131_v17  ;;  %371 = vmatprep.subr.mxu1 %v358_v40  ;;  %v173_v53 = vld [vmem:[#allocation5 + $0x1c0] sm:$0xff]  ;;  %v351_v54 = vld [vmem:[#allocation7 + $0x90] sm:$0xff]  ;;  %v172_v55 = vld [vmem:[#allocation5 + $0x1b8] sm:$0xff] }
  0x50   :  { %199 = vmatprep.subr.mxu0 %v130_v18  ;;  %372 = vmatpush1.msra.mxu1 %v357_v42  ;;  %v350_v56 = vld [vmem:[#allocation7 + $0x88] sm:$0xff]  ;;  %v171_v57 = vld [vmem:[#allocation5 + $0x1b0] sm:$0xff]  ;;  %v349_v58 = vld [vmem:[#allocation7 + $0x80] sm:$0xff] }
  0x51   :  { %200 = vmatpush1.msra.mxu0 %v129_v19  ;;  %373 = vmatprep.subr.mxu1 %v356_v44  ;;  %v170_v59 = vld [vmem:[#allocation5 + $0x1a8] sm:$0xff]  ;;  %v348_v60 = vld [vmem:[#allocation7 + $0x78] sm:$0xff]  ;;  %v169_v61 = vld [vmem:[#allocation5 + $0x1a0] sm:$0xff] }
  0x52   :  { %201 = vmatprep.subr.mxu0 %v128_v20  ;;  %374 = vmatpush1.msra.mxu1 %v355_v46  ;;  %v347_v62 = vld [vmem:[#allocation7 + $0x70] sm:$0xff]  ;;  %v168_v63 = vld [vmem:[#allocation5 + $0x198] sm:$0xff]  ;;  %v346_v0 = vld [vmem:[#allocation7 + $0x68] sm:$0xff] }
  0x53   :  { %202 = vmatpush1.msra.mxu0 %v127_v21  ;;  %375 = vmatprep.subr.mxu1 %v354_v48  ;;  %v167_v1 = vld [vmem:[#allocation5 + $0x190] sm:$0xff]  ;;  %v345_v2 = vld [vmem:[#allocation7 + $0x60] sm:$0xff]  ;;  %v166_v3 = vld [vmem:[#allocation5 + $0x188] sm:$0xff]  ;;  %v1140_v48 = vmov 0.0  }
  0x54   :  { %203 = vmatprep.subr.mxu0 %v126_v22  ;;  %376 = vmatpush1.msra.mxu1 %v353_v50  ;;  %v344_v4 = vld [vmem:[#allocation7 + $0x58] sm:$0xff]  ;;  %v165_v5 = vld [vmem:[#allocation5 + $0x180] sm:$0xff]  ;;  %v343_v6 = vld [vmem:[#allocation7 + $0x50] sm:$0xff] }
  0x55   :  { %204 = vmatpush1.msra.mxu0 %v125_v23  ;;  %377 = vmatprep.subr.mxu1 %v352_v52  ;;  %v164_v7 = vld [vmem:[#allocation5 + $0x178] sm:$0xff]  ;;  %v342_v8 = vld [vmem:[#allocation7 + $0x48] sm:$0xff]  ;;  %v163_v9 = vld [vmem:[#allocation5 + $0x170] sm:$0xff] }
  0x56   :  { %205 = vmatprep.subr.mxu0 %v124_v25  ;;  %378 = vmatpush1.msra.mxu1 %v351_v54  ;;  %v341_v10 = vld [vmem:[#allocation7 + $0x40] sm:$0xff]  ;;  %v162_v11 = vld [vmem:[#allocation5 + $0x168] sm:$0xff]  ;;  %v340_v12 = vld [vmem:[#allocation7 + $0x38] sm:$0xff] }
  0x57   :  { %206 = vmatpush1.msra.mxu0 %v123_v26  ;;  %379 = vmatprep.subr.mxu1 %v350_v56  ;;  %v161_v13 = vld [vmem:[#allocation5 + $0x160] sm:$0xff]  ;;  %v339_v14 = vld [vmem:[#allocation7 + $0x30] sm:$0xff]  ;;  %v160_v15 = vld [vmem:[#allocation5 + $0x158] sm:$0xff] }
  0x58   :  { %207 = vmatprep.subr.mxu0 %v122_v27  ;;  %380 = vmatpush1.msra.mxu1 %v349_v58  ;;  %v159_v16 = vld [vmem:[#allocation5 + $0x150] sm:$0xff]  ;;  %v158_v17 = vld [vmem:[#allocation5 + $0x148] sm:$0xff]  ;;  %v157_v18 = vld [vmem:[#allocation5 + $0x140] sm:$0xff] }
  0x59   :  { %208 = vmatpush1.msra.mxu0 %v121_v28  ;;  %381 = vmatprep.subr.mxu1 %v348_v60  ;;  %v156_v19 = vld [vmem:[#allocation5 + $0x138] sm:$0xff]  ;;  %v155_v20 = vld [vmem:[#allocation5 + $0x130] sm:$0xff]  ;;  %v154_v21 = vld [vmem:[#allocation5 + $0x128] sm:$0xff] }
  0x5a   :  { %209 = vmatprep.subr.mxu0 %v120_v29  ;;  %382 = vmatpush1.msra.mxu1 %v347_v62  ;;  %v153_v22 = vld [vmem:[#allocation5 + $0x120] sm:$0xff]  ;;  %v152_v23 = vld [vmem:[#allocation5 + $0x118] sm:$0xff]  ;;  %v151_v24 = vld [vmem:[#allocation5 + $0x110] sm:$0xff] }
  0x5b   :  { %210 = vmatpush1.msra.mxu0 %v119_v30  ;;  %383 = vmatprep.subr.mxu1 %v346_v0  ;;  %v150_v25 = vld [vmem:[#allocation5 + $0x108] sm:$0xff]  ;;  %v149_v26 = vld [vmem:[#allocation5 + $0x100] sm:$0xff]  ;;  %v104_v28 = vld [vmem:[#allocation2 + $0x18] sm:$0xff] }
  0x5c   :  { %211 = vmatprep.subr.mxu0 %v118_v35  ;;  %384 = vmatpush1.msra.mxu1 %v345_v2  ;;  %v101_v27 = vld [vmem:[#allocation2] sm:$0xff]  ;;  %v103_v29 = vld [vmem:[#allocation2 + $0x10] sm:$0xff]  ;;  %v106_v30 = vld [vmem:[#allocation2 + $0x28] sm:$0xff] }
  0x5d   :  { %212 = vmatpush1.msra.mxu0 %v117_v37  ;;  %385 = vmatprep.subr.mxu1 %v344_v4  ;;  %v105_v31 = vld [vmem:[#allocation2 + $0x20] sm:$0xff]  ;;  %v108_v32 = vld [vmem:[#allocation2 + $0x38] sm:$0xff]  ;;  %v107_v33 = vld [vmem:[#allocation2 + $0x30] sm:$0xff] }
  0x5e   :  { %213 = vmatprep.subr.mxu0 %v180_v39  ;;  %386 = vmatpush1.msra.mxu1 %v343_v6  ;;  %v110_v34 = vld [vmem:[#allocation2 + $0x48] sm:$0xff]  ;;  %v109_v35 = vld [vmem:[#allocation2 + $0x40] sm:$0xff]  ;;  %v112_v36 = vld [vmem:[#allocation2 + $0x58] sm:$0xff] }
  0x5f   :  { %214 = vmatpush2.msra.mxu0 %v179_v41  ;;  %387 = vmatprep.subr.mxu1 %v342_v8  ;;  %v111_v37 = vld [vmem:[#allocation2 + $0x50] sm:$0xff]  ;;  %v114_v38 = vld [vmem:[#allocation2 + $0x68] sm:$0xff]  ;;  %v113_v39 = vld [vmem:[#allocation2 + $0x60] sm:$0xff] }
  0x60   :  { %215 = vmatprep.subr.mxu0 %v178_v43  ;;  %388 = vmatpush1.msra.mxu1 %v341_v10  ;;  %v116_v40 = vld [vmem:[#allocation2 + $0x78] sm:$0xff]  ;;  %v115_v41 = vld [vmem:[#allocation2 + $0x70] sm:$0xff]  ;;  %v338_v42 = vld [vmem:[#allocation7 + $0x28] sm:$0xff] }
  0x61   :  { %216 = vmatpush2.msra.mxu0 %v177_v45  ;;  %389 = vmatprep.subr.mxu1 %v340_v12  ;;  %v337_v43 = vld [vmem:[#allocation7 + $0x20] sm:$0xff]  ;;  %v336_v44 = vld [vmem:[#allocation7 + $0x18] sm:$0xff]  ;;  %v335_v45 = vld [vmem:[#allocation7 + $0x10] sm:$0xff] }
  0x62   :  { %217 = vmatprep.subr.mxu0 %v176_v47  ;;  %390 = vmatpush1.msra.mxu1 %v339_v14  ;;  %v334_v46 = vld [vmem:[#allocation7 + $0x8] sm:$0xff]  ;;  %v333_v47 = vld [vmem:[#allocation7] sm:$0xff]  ;;  %v555_v56 = vld [vmem:[#allocation8 + $0xf0] sm:$0xff] }
  0x63   :  { %218 = vmatpush2.msra.mxu0 %v175_v49  ;;  %391 = vmatprep.subr.mxu1 %v338_v42  ;;  %v556_v49 = vld [vmem:[#allocation8 + $0xf8] sm:$0xff]  ;;  %v1226_v50 = vld [vmem:[%s1362_s5] ss:$0 sm:$0xff]  ;;  %v550_v4 = vld [vmem:[#allocation8 + $0xc8] sm:$0xff] }
  0x64   :  { %219 = vmatprep.subr.mxu0 %v174_v51  ;;  %392 = vmatpush1.msra.mxu1 %v337_v43  ;;  %v549_v6 = vld [vmem:[#allocation8 + $0xc0] sm:$0xff]  ;;  %v548_v8 = vld [vmem:[#allocation8 + $0xb8] sm:$0xff]  ;;  %v547_v10 = vld [vmem:[#allocation8 + $0xb0] sm:$0xff] }
  0x65   :  { %220 = vmatpush2.msra.mxu0 %v173_v53  ;;  %393 = vmatprep.subr.mxu1 %v336_v44  ;;  %v533_v42 = vld [vmem:[#allocation8 + $0x40] sm:$0xff]  ;;  %v532_v44 = vld [vmem:[#allocation8 + $0x38] sm:$0xff] }
  0x66   :  { %221 = vmatprep.subr.mxu0 %v172_v55  ;;  %394 = vmatpush1.msra.mxu1 %v335_v45 }
  0x67   :  { %222 = vmatpush2.msra.mxu0 %v171_v57  ;;  %395 = vmatprep.subr.mxu1 %v334_v46 }
  0x68   :  { %223 = vmatprep.subr.mxu0 %v170_v59  ;;  %396 = vmatpush1.msra.mxu1 %v333_v47  ;;  %v554_v59 = vld [vmem:[#allocation8 + $0xe8] sm:$0xff] }
  0x69   :  { %224 = vmatpush2.msra.mxu0 %v169_v61  ;;  %429 = vmatprep.mubr.f32.mxu1 %v1140_v48  ;;  %v553_v61 = vld [vmem:[#allocation8 + $0xe0] sm:$0xff] }
  0x6a   :  { %225 = vmatprep.subr.mxu0 %v168_v63  ;;  %557 = vmatprep.subr.mxu1 %v556_v49  ;;  %v552_v63 = vld [vmem:[#allocation8 + $0xd8] sm:$0xff] }
  0x6b   :  { %226 = vmatpush2.msra.mxu0 %v167_v1  ;;  %v551_v1 = vld [vmem:[#allocation8 + $0xd0] sm:$0xff] }
  0x6c   :  { %227 = vmatprep.subr.mxu0 %v166_v3 }
  0x6d   :  { %228 = vmatpush2.msra.mxu0 %v165_v5 }
  0x6e   :  { %229 = vmatprep.subr.mxu0 %v164_v7 }
  0x6f   :  { %230 = vmatpush2.msra.mxu0 %v163_v9 }
  0x70   :  { %231 = vmatprep.subr.mxu0 %v162_v11 }
  0x71   :  { %232 = vmatpush2.msra.mxu0 %v161_v13  ;;  %v546_v13 = vld [vmem:[#allocation8 + $0xa8] sm:$0xff] }
  0x72   :  { %233 = vmatprep.subr.mxu0 %v160_v15  ;;  %v545_v15 = vld [vmem:[#allocation8 + $0xa0] sm:$0xff] }
  0x73   :  { %234 = vmatpush2.msra.mxu0 %v159_v16 }
  0x74   :  { %235 = vmatprep.subr.mxu0 %v158_v17  ;;  %v544_v17 = vld [vmem:[#allocation8 + $0x98] sm:$0xff] }
  0x75   :  { %236 = vmatpush2.msra.mxu0 %v157_v18 }
  0x76   :  { %237 = vmatprep.subr.mxu0 %v156_v19  ;;  %v543_v19 = vld [vmem:[#allocation8 + $0x90] sm:$0xff] }
  0x77   :  { %238 = vmatpush2.msra.mxu0 %v155_v20 }
  0x78   :  { %239 = vmatprep.subr.mxu0 %v154_v21 }
  0x79   :  { %240 = vmatpush2.msra.mxu0 %v153_v22  ;;  %v542_v22 = vld [vmem:[#allocation8 + $0x88] sm:$0xff] }
  0x7a   :  { %241 = vmatprep.subr.mxu0 %v152_v23 }
  0x7b   :  { %242 = vmatpush2.msra.mxu0 %v151_v24  ;;  %v541_v24 = vld [vmem:[#allocation8 + $0x80] sm:$0xff] }
  0x7c   :  { %243 = vmatprep.subr.mxu0 %v150_v25 }
  0x7d   :  { %244 = vmatpush2.msra.mxu0 %v149_v26  ;;  %v540_v26 = vld [vmem:[#allocation8 + $0x78] sm:$0xff] }
  0x7e   :  { %246 = vmatmul.mubr.f32.vlgmr.msra.gmra.mxu0 %v101_v27 }
  0x7f   :  { %251 = vmatprep.mubr.f32.mxu0 %v104_v28  ;;  %v539_v28 = vld [vmem:[#allocation8 + $0x70] sm:$0xff] }
  0x82   :  { %252 = vmatmul.mubr.f32.gmra.mxu0 %v103_v29 }
  0x83   :  { %257 = vmatprep.mubr.f32.mxu0 %v106_v30 }
  0x86   :  { %258 = vmatmul.mubr.f32.gmra.mxu0 %v105_v31  ;;  %v538_v31 = vld [vmem:[#allocation8 + $0x68] sm:$0xff] }
  0x87   :  { %263 = vmatprep.mubr.f32.mxu0 %v108_v32 }
  0x8a   :  { %264 = vmatmul.mubr.f32.gmra.mxu0 %v107_v33  ;;  %v537_v33 = vld [vmem:[#allocation8 + $0x60] sm:$0xff] }
  0x8b   :  { %269 = vmatprep.mubr.f32.mxu0 %v110_v34 }
  0x8e   :  { %270 = vmatmul.mubr.f32.gmra.mxu0 %v109_v35  ;;  %v536_v35 = vld [vmem:[#allocation8 + $0x58] sm:$0xff] }
  0x8f   :  { %275 = vmatprep.mubr.f32.mxu0 %v112_v36 }
  0x92   :  { %276 = vmatmul.mubr.f32.gmra.mxu0 %v111_v37  ;;  %v535_v37 = vld [vmem:[#allocation8 + $0x50] sm:$0xff] }
  0x93   :  { %281 = vmatprep.mubr.f32.mxu0 %v114_v38 }
  0x96   :  { %282 = vmatmul.mubr.f32.gmra.mxu0 %v113_v39 }
  0x97   :  { %287 = vmatprep.mubr.f32.mxu0 %v116_v40  ;;  %v534_v40 = vld [vmem:[#allocation8 + $0x48] sm:$0xff] }
  0x9a   :  { %288 = vmatmul.mubr.f32.gmra.mxu0 %v115_v41 }
 0x13e   :  { %v247_v51 = vpop.f32.mrf.mxu0 }
 0x13f   :  { %v301_v52 = vadd.f32 %v1226_v50, %v247_v51 }
 0x140   :  { %v1229_v53 = vpop.f32.mrf.mxu0 }
 0x141   :  { %v317_v54 = vmul.f32 0.01, %v301_v52  ;;  %vm309_vm0 = vcmp.ge.f32.partialorder %v301_v52, 0.0 }
 0x142   :  { %v253_v55 = vpop.f32.mrf.mxu0 }
 0x143   :  { %v302_v57 = vadd.f32 %v1226_v50, %v253_v55  ;;  %v325_v58 = vsel %vm309_vm0, %v301_v52, %v317_v54  ;;  %v531_v52 = vld [vmem:[#allocation8 + $0x30] sm:$0xff]  ;;  %v530_v54 = vld [vmem:[#allocation8 + $0x28] sm:$0xff]  ;;  %v529_v55 = vld [vmem:[#allocation8 + $0x20] sm:$0xff] }
 0x144   :  { %v1232_v60 = vpop.f32.mrf.mxu0  ;;  %430 = vmatmul.mubr.f32.vlgmr.msra.gmra.mxu1 %v325_v58  ;;  %v525_v58 = vld [vmem:[#allocation8] sm:$0xff] }
 0x145   :  { %v318_v62 = vmul.f32 0.01, %v302_v57  ;;  %435 = vmatprep.mubr.f32.mxu1 %v1140_v48  ;;  %vm310_vm1 = vcmp.ge.f32.partialorder %v302_v57, 0.0  ;;  %558 = vmatpush1.msra.mxu1 %v555_v56  ;;  %v528_v56 = vld [vmem:[#allocation8 + $0x18] sm:$0xff] }
 0x146   :  { %v259_v0 = vpop.f32.mrf.mxu0  ;;  %559 = vmatprep.subr.mxu1 %v554_v59  ;;  %v732_v59 = vld [vmem:[#allocation10 + $0x78] sm:$0xff] }
 0x147   :  { %v303_v2 = vadd.f32 %v1226_v50, %v259_v0  ;;  %v326_v3 = vsel %vm310_vm1, %v302_v57, %v318_v62  ;;  %560 = vmatpush1.msra.mxu1 %v553_v61  ;;  %v526_v57 = vld [vmem:[#allocation8 + $0x8] sm:$0xff]  ;;  %v731_v61 = vld [vmem:[#allocation10 + $0x70] sm:$0xff]  ;;  %916 = vmatprep.subr.mxu0 %v732_v59  ;;  %v1258_v0 = vld [vmem:[#allocation10 + $0x58] sm:$0xff] }
 0x148   :  { %v1236_v5 = vpop.f32.mrf.mxu0  ;;  %436 = vmatmul.mubr.f32.gmra.mxu1 %v326_v3  ;;  %561 = vmatprep.subr.mxu1 %v552_v63  ;;  %v730_v62 = vld [vmem:[#allocation10 + $0x68] sm:$0xff]  ;;  %v729_v63 = vld [vmem:[#allocation10 + $0x60] sm:$0xff] }
 0x149   :  { %v319_v7 = vmul.f32 0.01, %v303_v2  ;;  %441 = vmatprep.mubr.f32.mxu1 %v1140_v48  ;;  %vm311_vm2 = vcmp.ge.f32.partialorder %v303_v2, 0.0  ;;  %562 = vmatpush1.msra.mxu1 %v551_v1  ;;  %v1260_v1 = vld [vmem:[#allocation10 + $0x50] sm:$0xff]  ;;  %v1268_v3 = vld [vmem:[#allocation10 + $0x40] sm:$0xff] }
 0x14a   :  { %v265_v9 = vpop.f32.mrf.mxu0  ;;  %563 = vmatprep.subr.mxu1 %v550_v4  ;;  %917 = vmatpush3.msra.mxu0 %v732_v59  ;;  %v1272_v4 = vld [vmem:[#allocation10 + $0x38] sm:$0xff] }
 0x14b   :  { %v304_v11 = vadd.f32 %v1226_v50, %v265_v9  ;;  %v327_v12 = vsel %vm311_vm2, %v303_v2, %v319_v7  ;;  %564 = vmatpush1.msra.mxu1 %v549_v6  ;;  %918 = vmatprep.subr.mxu0 %v731_v61  ;;  %v1264_v2 = vld [vmem:[#allocation10 + $0x48] sm:$0xff]  ;;  %v1276_v6 = vld [vmem:[#allocation10 + $0x30] sm:$0xff] }
 0x14c   :  { %v1240_v14 = vpop.f32.mrf.mxu0  ;;  %442 = vmatmul.mubr.f32.gmra.mxu1 %v327_v12  ;;  %565 = vmatprep.subr.mxu1 %v548_v8  ;;  %v1285_v8 = vld [vmem:[%s1363_s6] ss:$0 sm:$0xff] }
 0x14d   :  { %v320_v16 = vmul.f32 0.01, %v304_v11  ;;  %447 = vmatprep.mubr.f32.mxu1 %v1140_v48  ;;  %vm312_vm3 = vcmp.ge.f32.partialorder %v304_v11, 0.0  ;;  %566 = vmatpush1.msra.mxu1 %v547_v10 }
 0x14e   :  { %v271_v18 = vpop.f32.mrf.mxu0  ;;  %567 = vmatprep.subr.mxu1 %v546_v13  ;;  %919 = vmatpush3.msra.mxu0 %v731_v61 }
 0x14f   :  { %v305_v20 = vadd.f32 %v1226_v50, %v271_v18  ;;  %v328_v21 = vsel %vm312_vm3, %v304_v11, %v320_v16  ;;  %568 = vmatpush1.msra.mxu1 %v545_v15  ;;  %920 = vmatprep.subr.mxu0 %v730_v62 }
 0x150   :  { %v1244_v23 = vpop.f32.mrf.mxu0  ;;  %448 = vmatmul.mubr.f32.gmra.mxu1 %v328_v21  ;;  %569 = vmatprep.subr.mxu1 %v544_v17 }
 0x151   :  { %v321_v25 = vmul.f32 0.01, %v305_v20  ;;  %453 = vmatprep.mubr.f32.mxu1 %v1140_v48  ;;  %vm313_vm4 = vcmp.ge.f32.partialorder %v305_v20, 0.0  ;;  %570 = vmatpush1.msra.mxu1 %v543_v19 }
 0x152   :  { %v277_v27 = vpop.f32.mrf.mxu0  ;;  %571 = vmatprep.subr.mxu1 %v542_v22  ;;  %921 = vmatpush3.msra.mxu0 %v730_v62 }
 0x153   :  { %v306_v29 = vadd.f32 %v1226_v50, %v277_v27  ;;  %v329_v30 = vsel %vm313_vm4, %v305_v20, %v321_v25  ;;  %572 = vmatpush1.msra.mxu1 %v541_v24  ;;  %922 = vmatprep.subr.mxu0 %v729_v63 }
 0x154   :  { %v1248_v32 = vpop.f32.mrf.mxu0  ;;  %454 = vmatmul.mubr.f32.gmra.mxu1 %v329_v30  ;;  %573 = vmatprep.subr.mxu1 %v540_v26 }
 0x155   :  { %v322_v34 = vmul.f32 0.01, %v306_v29  ;;  %459 = vmatprep.mubr.f32.mxu1 %v1140_v48  ;;  %vm314_vm5 = vcmp.ge.f32.partialorder %v306_v29, 0.0  ;;  %574 = vmatpush1.msra.mxu1 %v539_v28 }
 0x156   :  { %v283_v36 = vpop.f32.mrf.mxu0  ;;  %575 = vmatprep.subr.mxu1 %v538_v31  ;;  %923 = vmatpush3.msra.mxu0 %v729_v63 }
 0x157   :  { %v307_v38 = vadd.f32 %v1226_v50, %v283_v36  ;;  %v330_v39 = vsel %vm314_vm5, %v306_v29, %v322_v34  ;;  %576 = vmatpush1.msra.mxu1 %v537_v33  ;;  %924 = vmatprep.subr.mxu0 %v1258_v0 }
 0x158   :  { %v1252_v41 = vpop.f32.mrf.mxu0  ;;  %460 = vmatmul.mubr.f32.gmra.mxu1 %v330_v39  ;;  %577 = vmatprep.subr.mxu1 %v536_v35 }
 0x159   :  { %v323_v43 = vmul.f32 0.01, %v307_v38  ;;  %465 = vmatprep.mubr.f32.mxu1 %v1140_v48  ;;  %vm315_vm6 = vcmp.ge.f32.partialorder %v307_v38, 0.0  ;;  %578 = vmatpush1.msra.mxu1 %v535_v37 }
 0x15a   :  { %v289_v45 = vpop.f32.mrf.mxu0  ;;  %579 = vmatprep.subr.mxu1 %v534_v40  ;;  %925 = vmatpush3.msra.mxu0 %v1258_v0 }
 0x15b   :  { %v308_v46 = vadd.f32 %v1226_v50, %v289_v45  ;;  %v331_v47 = vsel %vm315_vm6, %v307_v38, %v323_v43  ;;  %580 = vmatpush1.msra.mxu1 %v533_v42  ;;  %v527_v50 = vld [vmem:[#allocation8 + $0x10] sm:$0xff]  ;;  %926 = vmatprep.subr.mxu0 %v1260_v1 }
 0x15c   :  { %466 = vmatmul.mubr.f32.gmra.mxu1 %v331_v47  ;;  %581 = vmatprep.subr.mxu1 %v532_v44 }
 0x15d   :  { %v324_v49 = vmul.f32 0.01, %v308_v46  ;;  %471 = vmatprep.mubr.f32.mxu1 %v1140_v48  ;;  %vm316_vm7 = vcmp.ge.f32.partialorder %v308_v46, 0.0  ;;  %582 = vmatpush1.msra.mxu1 %v531_v52 }
 0x15e   :  { %583 = vmatprep.subr.mxu1 %v530_v54  ;;  %927 = vmatpush3.msra.mxu0 %v1260_v1 }
 0x15f   :  { %v332_v51 = vsel %vm316_vm7, %v308_v46, %v324_v49  ;;  %584 = vmatpush1.msra.mxu1 %v529_v55  ;;  %928 = vmatprep.subr.mxu0 %v1264_v2  ;;  %v291_v46 = vpop.f32.mrf.mxu0 }
 0x160   :  { %472 = vmatmul.mubr.f32.gmra.mxu1 %v332_v51  ;;  %585 = vmatprep.subr.mxu1 %v528_v56  ;;  %v722_v56 = vld [vmem:[#allocation10 + $0x28] sm:$0xff] }
 0x161   :  { %621 = vmatprep.mubr.f32.mxu1 %v1140_v48  ;;  %586 = vmatpush1.msra.mxu1 %v527_v50  ;;  %v721_v50 = vld [vmem:[#allocation10 + $0x20] sm:$0xff] }
 0x162   :  { %587 = vmatprep.subr.mxu1 %v526_v57  ;;  %929 = vmatpush3.msra.mxu0 %v1264_v2  ;;  %v720_v57 = vld [vmem:[#allocation10 + $0x18] sm:$0xff] }
 0x163   :  { %588 = vmatpush1.msra.mxu1 %v525_v58  ;;  %930 = vmatprep.subr.mxu0 %v1268_v3  ;;  %v719_v58 = vld [vmem:[#allocation10 + $0x10] sm:$0xff] }
 0x164   :  { %960 = vmatprep.subr.mxu1 %v732_v59  ;;  %931 = vmatpush3.msra.mxu0 %v1268_v3 }
 0x165   :  { %932 = vmatprep.subr.mxu0 %v1272_v4 }
 0x166   :  { %933 = vmatpush3.msra.mxu0 %v1272_v4 }
 0x167   :  { %934 = vmatprep.subr.mxu0 %v1276_v6 }
 0x168   :  { %935 = vmatpush3.msra.mxu0 %v1276_v6 }
 0x169   :  { %936 = vmatprep.subr.mxu0 %v722_v56 }
 0x16a   :  { %937 = vmatpush3.msra.mxu0 %v722_v56 }
 0x16b   :  { %938 = vmatprep.subr.mxu0 %v721_v50 }
 0x16c   :  { %939 = vmatpush3.msra.mxu0 %v721_v50 }
 0x16d   :  { %940 = vmatprep.subr.mxu0 %v720_v57 }
 0x16e   :  { %941 = vmatpush3.msra.mxu0 %v720_v57 }
 0x16f   :  { %942 = vmatprep.subr.mxu0 %v719_v58 }
 0x170   :  { %943 = vmatpush3.msra.mxu0 %v719_v58 }
 0x204   :  { %v431_v7 = vpop.f32.mrf.mxu1 }
 0x205   :  { %v478_v9 = vadd.f32 %v431_v7, %v1229_v53 }
 0x206   :  { %v1288_v10 = vpop.f32.mrf.mxu1 }
 0x207   :  { %v493_v11 = vadd.f32 %v1285_v8, %v478_v9 }
 0x208   :  { %v437_v12 = vpop.f32.mrf.mxu1 }
 0x209   :  { %vm501_vm8 = vcmp.ge.f32.partialorder %v493_v11, 0.0  ;;  %v509_v13 = vmul.f32 0.01, %v493_v11  ;;  %v479_v15 = vadd.f32 %v437_v12, %v1232_v60 }
 0x20a   :  { %v1292_v16 = vpop.f32.mrf.mxu1 }
 0x20b   :  { %v494_v17 = vadd.f32 %v1285_v8, %v479_v15  ;;  %v517_v18 = vsel %vm501_vm8, %v493_v11, %v509_v13 }
 0x20c   :  { %v443_v19 = vpop.f32.mrf.mxu1  ;;  %622 = vmatmul.mubr.f32.vlgmr.msra.gmra.mxu1 %v517_v18 }
 0x20d   :  { %v480_v20 = vadd.f32 %v443_v19, %v1236_v5  ;;  %627 = vmatprep.mubr.f32.mxu1 %v1140_v48  ;;  %vm502_vm9 = vcmp.ge.f32.partialorder %v494_v17, 0.0  ;;  %v510_v53 = vmul.f32 0.01, %v494_v17  ;;  %976 = vmatpush3.msra.mxu1 %v732_v59  ;;  %v717_v59 = vld [vmem:[#allocation10] sm:$0xff] }
 0x20e   :  { %v1297_v21 = vpop.f32.mrf.mxu1  ;;  %961 = vmatprep.subr.mxu1 %v731_v61 }
 0x20f   :  { %v495_v22 = vadd.f32 %v1285_v8, %v480_v20  ;;  %v518_v60 = vsel %vm502_vm9, %v494_v17, %v510_v53  ;;  %977 = vmatpush3.msra.mxu1 %v731_v61 }
 0x210   :  { %v449_v24 = vpop.f32.mrf.mxu1  ;;  %628 = vmatmul.mubr.f32.gmra.mxu1 %v518_v60  ;;  %962 = vmatprep.subr.mxu1 %v730_v62 }
 0x211   :  { %v481_v25 = vadd.f32 %v449_v24, %v1240_v14  ;;  %633 = vmatprep.mubr.f32.mxu1 %v1140_v48  ;;  %vm503_vm10 = vcmp.ge.f32.partialorder %v495_v22, 0.0  ;;  %v511_v5 = vmul.f32 0.01, %v495_v22  ;;  %978 = vmatpush3.msra.mxu1 %v730_v62 }
 0x212   :  { %v1302_v26 = vpop.f32.mrf.mxu1  ;;  %963 = vmatprep.subr.mxu1 %v729_v63 }
 0x213   :  { %v496_v27 = vadd.f32 %v1285_v8, %v481_v25  ;;  %v519_v28 = vsel %vm503_vm10, %v495_v22, %v511_v5  ;;  %979 = vmatpush3.msra.mxu1 %v729_v63  ;;  %v890_v63 = vld [vmem:[%s1364_s7] ss:$0 sm:$0xff] }
 0x214   :  { %v455_v29 = vpop.f32.mrf.mxu1  ;;  %634 = vmatmul.mubr.f32.gmra.mxu1 %v519_v28  ;;  %964 = vmatprep.subr.mxu1 %v1258_v0 }
 0x215   :  { %v482_v30 = vadd.f32 %v455_v29, %v1244_v23  ;;  %639 = vmatprep.mubr.f32.mxu1 %v1140_v48  ;;  %vm504_vm11 = vcmp.ge.f32.partialorder %v496_v27, 0.0  ;;  %v512_v14 = vmul.f32 0.01, %v496_v27  ;;  %980 = vmatpush3.msra.mxu1 %v1258_v0 }
 0x216   :  { %v1309_v31 = vpop.f32.mrf.mxu1  ;;  %965 = vmatprep.subr.mxu1 %v1260_v1 }
 0x217   :  { %v497_v33 = vadd.f32 %v1285_v8, %v482_v30  ;;  %v520_v34 = vsel %vm504_vm11, %v496_v27, %v512_v14  ;;  %981 = vmatpush3.msra.mxu1 %v1260_v1 }
 0x218   :  { %v461_v35 = vpop.f32.mrf.mxu1  ;;  %640 = vmatmul.mubr.f32.gmra.mxu1 %v520_v34  ;;  %966 = vmatprep.subr.mxu1 %v1264_v2 }
 0x219   :  { %v483_v23 = vadd.f32 %v461_v35, %v1248_v32  ;;  %645 = vmatprep.mubr.f32.mxu1 %v1140_v48  ;;  %vm505_vm12 = vcmp.ge.f32.partialorder %v497_v33, 0.0  ;;  %v513_v36 = vmul.f32 0.01, %v497_v33  ;;  %982 = vmatpush3.msra.mxu1 %v1264_v2 }
 0x21a   :  { %v1318_v37 = vpop.f32.mrf.mxu1  ;;  %967 = vmatprep.subr.mxu1 %v1268_v3 }
 0x21b   :  { %v498_v38 = vadd.f32 %v1285_v8, %v483_v23  ;;  %v521_v39 = vsel %vm505_vm12, %v497_v33, %v513_v36  ;;  %983 = vmatpush3.msra.mxu1 %v1268_v3 }
 0x21c   :  { %v467_v40 = vpop.f32.mrf.mxu1  ;;  %646 = vmatmul.mubr.f32.gmra.mxu1 %v521_v39  ;;  %968 = vmatprep.subr.mxu1 %v1272_v4 }
 0x21d   :  { %v484_v32 = vadd.f32 %v467_v40, %v1252_v41  ;;  %651 = vmatprep.mubr.f32.mxu1 %v1140_v48  ;;  %vm506_vm13 = vcmp.ge.f32.partialorder %v498_v38, 0.0  ;;  %v514_v42 = vmul.f32 0.01, %v498_v38  ;;  %984 = vmatpush3.msra.mxu1 %v1272_v4 }
 0x21e   :  { %v1327_v43 = vpop.f32.mrf.mxu1  ;;  %969 = vmatprep.subr.mxu1 %v1276_v6 }
 0x21f   :  { %v499_v44 = vadd.f32 %v1285_v8, %v484_v32  ;;  %v522_v45 = vsel %vm506_vm13, %v498_v38, %v514_v42  ;;  %985 = vmatpush3.msra.mxu1 %v1276_v6 }
 0x220   :  { %v473_v47 = vpop.f32.mrf.mxu1  ;;  %652 = vmatmul.mubr.f32.gmra.mxu1 %v522_v45  ;;  %970 = vmatprep.subr.mxu1 %v722_v56 }
 0x221   :  { %v485_v49 = vadd.f32 %v473_v47, %v291_v46  ;;  %657 = vmatprep.mubr.f32.mxu1 %v1140_v48  ;;  %vm507_vm14 = vcmp.ge.f32.partialorder %v499_v44, 0.0  ;;  %v515_v41 = vmul.f32 0.01, %v499_v44  ;;  %986 = vmatpush3.msra.mxu1 %v722_v56 }
 0x222   :  { %971 = vmatprep.subr.mxu1 %v721_v50  ;;  %v475_v61 = vpop.f32.mrf.mxu1 }
 0x223   :  { %v500_v51 = vadd.f32 %v1285_v8, %v485_v49  ;;  %v523_v52 = vsel %vm507_vm14, %v499_v44, %v515_v41  ;;  %987 = vmatpush3.msra.mxu1 %v721_v50 }
 0x224   :  { %658 = vmatmul.mubr.f32.gmra.mxu1 %v523_v52  ;;  %972 = vmatprep.subr.mxu1 %v720_v57 }
 0x225   :  { %663 = vmatprep.mubr.f32.mxu1 %v1140_v48  ;;  %vm508_vm15 = vcmp.ge.f32.partialorder %v500_v51, 0.0  ;;  %v516_v54 = vmul.f32 0.01, %v500_v51  ;;  %988 = vmatpush3.msra.mxu1 %v720_v57  ;;  %v718_v48 = vld [vmem:[#allocation10 + $0x8] sm:$0xff] }
 0x226   :  { %973 = vmatprep.subr.mxu1 %v719_v58  ;;  %944 = vmatprep.subr.mxu0 %v718_v48 }
 0x227   :  { %v524_v55 = vsel %vm508_vm15, %v500_v51, %v516_v54  ;;  %989 = vmatpush3.msra.mxu1 %v719_v58  ;;  %945 = vmatpush3.msra.mxu0 %v718_v48 }
 0x228   :  { %664 = vmatmul.mubr.f32.gmra.mxu1 %v524_v55  ;;  %974 = vmatprep.subr.mxu1 %v718_v48 }
 0x229   :  { %990 = vmatpush3.msra.mxu1 %v718_v48  ;;  %946 = vmatprep.subr.mxu0 %v717_v59 }
 0x22a   :  { %975 = vmatprep.subr.mxu1 %v717_v59  ;;  %947 = vmatpush3.msra.mxu0 %v717_v59 }
 0x22b   :  { %991 = vmatpush3.msra.mxu1 %v717_v59 }
 0x2cc   :  { %v623_v62 = vpop.f32.mrf.mxu1 }
 0x2cd   :  { %v670_v0 = vadd.f32 %v623_v62, %v1288_v10 }
 0x2ce   :  { %v1339_v1 = vpop.f32.mrf.mxu1 }
 0x2cf   :  { %v685_v2 = vadd.f32 %v890_v63, %v670_v0 }
 0x2d0   :  { %v629_v3 = vpop.f32.mrf.mxu1 }
 0x2d1   :  { %v671_v4 = vadd.f32 %v629_v3, %v1292_v16  ;;  %vm693_vm0 = vcmp.ge.f32.partialorder %v685_v2, 0.0  ;;  %v701_v6 = vmul.f32 0.01, %v685_v2 }
 0x2d2   :  { %v631_v7 = vpop.f32.mrf.mxu1 }
 0x2d3   :  { %v686_v8 = vadd.f32 %v890_v63, %v671_v4  ;;  %v709_v9 = vsel %vm693_vm0, %v685_v2, %v701_v6 }
 0x2d4   :  { %v635_v11 = vpop.f32.mrf.mxu1  ;;  %948 = vmatprep.mubr.f32.mxu0 %v709_v9 }
 0x2d5   :  { %vm694_vm1 = vcmp.ge.f32.partialorder %v686_v8, 0.0  ;;  %v702_v12 = vmul.f32 0.01, %v686_v8  ;;  %v672_v13 = vadd.f32 %v635_v11, %v1297_v21 }
 0x2d6   :  { %v637_v15 = vpop.f32.mrf.mxu1 }
 0x2d7   :  { %v687_v17 = vadd.f32 %v890_v63, %v672_v13  ;;  %v710_v10 = vsel %vm694_vm1, %v686_v8, %v702_v12 }
 0x2d8   :  { %v641_v18 = vpop.f32.mrf.mxu1  ;;  %949 = vmatmul.mubr.f32.vlgmr.msra.gmra.mxu0 %v710_v10 }
 0x2d9   :  { %v673_v19 = vadd.f32 %v641_v18, %v1302_v26  ;;  %vm695_vm2 = vcmp.ge.f32.partialorder %v687_v17, 0.0  ;;  %v703_v16 = vmul.f32 0.01, %v687_v17 }
 0x2da   :  { %v643_v20 = vpop.f32.mrf.mxu1 }
 0x2db   :  { %v688_v53 = vadd.f32 %v890_v63, %v673_v19  ;;  %v711_v22 = vsel %vm695_vm2, %v687_v17, %v703_v16 }
 0x2dc   :  { %v647_v60 = vpop.f32.mrf.mxu1  ;;  %951 = vmatprep.mubr.f32.mxu0 %v711_v22 }
 0x2dd   :  { %v674_v24 = vadd.f32 %v647_v60, %v1309_v31  ;;  %vm696_vm3 = vcmp.ge.f32.partialorder %v688_v53, 0.0  ;;  %v704_v25 = vmul.f32 0.01, %v688_v53 }
 0x2de   :  { %v649_v5 = vpop.f32.mrf.mxu1 }
 0x2df   :  { %v689_v21 = vadd.f32 %v890_v63, %v674_v24  ;;  %v712_v27 = vsel %vm696_vm3, %v688_v53, %v704_v25 }
 0x2e0   :  { %v653_v28 = vpop.f32.mrf.mxu1  ;;  %952 = vmatmul.mubr.f32.gmra.mxu0 %v712_v27 }
 0x2e1   :  { %v675_v29 = vadd.f32 %v653_v28, %v1318_v37  ;;  %vm697_vm4 = vcmp.ge.f32.partialorder %v689_v21, 0.0  ;;  %v705_v26 = vmul.f32 0.01, %v689_v21 }
 0x2e2   :  { %v655_v30 = vpop.f32.mrf.mxu1 }
 0x2e3   :  { %v690_v14 = vadd.f32 %v890_v63, %v675_v29  ;;  %v713_v33 = vsel %vm697_vm4, %v689_v21, %v705_v26 }
 0x2e4   :  { %v659_v34 = vpop.f32.mrf.mxu1  ;;  %954 = vmatprep.mubr.f32.mxu1 %v713_v33 }
 0x2e5   :  { %vm698_vm5 = vcmp.ge.f32.partialorder %v690_v14, 0.0  ;;  %v706_v35 = vmul.f32 0.01, %v690_v14  ;;  %v676_v31 = vadd.f32 %v659_v34, %v1327_v43  ;;  %v891_v43 = vld [vmem:[%s1365_s8] ss:$0 sm:$0xff]  ;;  %s1141_s8 = smov [#allocation11]  }
 0x2e6   :  { %v661_v23 = vpop.f32.mrf.mxu1  ;;  %s874_s17 = sshll.u32 %s1141_s8, 4  ;;  %s875_s17 = int_to_ptr.vmem [resolvable:$true] %s874_s17 }
 0x2e7   :  { %v691_v36 = vadd.f32 %v890_v63, %v676_v31  ;;  %v714_v38 = vsel %vm698_vm5, %v690_v14, %v706_v35  ;;  %s1103_s18 = scalar_lea.vmem %s875_s17, 1024  ;;  %p1108_p12 = scmp.lt.s32.totalorder %s875_s17, %s875_s17 }
 0x2e8   :  { %v665_v39 = vpop.f32.mrf.mxu1  ;;  %955 = vmatmul.mubr.f32.vlgmr.msra.gmra.mxu1 %v714_v38  ;;  %p1104_p11 = scmp.ne.s32.totalorder %s875_s17, %s1103_s18  ;;  %p1109_p13 = scmp.lt.s32.totalorder %s1103_s18, %s1103_s18 }
 0x2e9   :  { %v677_v40 = vadd.f32 %v665_v39, %v475_v61  ;;  %vm699_vm6 = vcmp.ge.f32.partialorder %v691_v36, 0.0  ;;  %v707_v32 = vmul.f32 0.01, %v691_v36 }
 0x2ea   :  { %v667_v48 = vpop.f32.mrf.mxu1  ;;  %p1110_p0 = por %p1109_p13, %p1108_p12 }
 0x2eb   :  { %v692_v37 = vadd.f32 %v890_v63, %v677_v40  ;;  %v715_v42 = vsel %vm699_vm6, %v691_v36, %v707_v32 }
 0x2ec   :  { %957 = vmatprep.mubr.f32.mxu1 %v715_v42  ;;  %p1111_p1 = pnand %p1110_p0, %p1104_p11 }
 0x2ed   :  { %vm700_vm7 = vcmp.ge.f32.partialorder %v692_v37, 0.0  ;;  %v708_v44 = vmul.f32 0.01, %v692_v37 }
 0x2ef   :  { %v716_v45 = vsel %vm700_vm7, %v692_v37, %v708_v44 }
 0x2f0   :  { %958 = vmatmul.mubr.f32.gmra.mxu1 %v716_v45 }
 0x398   :  { %v950_v46 = vpop.f32.mrf.mxu0 }
 0x399   :  { %v839_v47 = vadd.f32 %v950_v46, %v631_v7 }
 0x39a   :  { %v799_v49 = vpop.f32.mrf.mxu0 }
 0x39b   :  { %v854_v41 = vadd.f32 %v891_v43, %v839_v47  ;;  %v838_v51 = vadd.f32 %v799_v49, %v1339_v1 }
 0x39d   :  { %862 = vst [vmem:[#allocation11 + $0x8] sm:$0xff] %v854_v41  ;;  %v853_v52 = vadd.f32 %v891_v43, %v838_v51 }
 0x39f   :  { %861 = vst [vmem:[#allocation11] sm:$0xff] %v853_v52 }
 0x3a0   :  { %v953_v54 = vpop.f32.mrf.mxu0 }
 0x3a1   :  { %v841_v55 = vadd.f32 %v953_v54, %v643_v20 }
 0x3a2   :  { %v809_v56 = vpop.f32.mrf.mxu0 }
 0x3a3   :  { %v856_v50 = vadd.f32 %v891_v43, %v841_v55  ;;  %v840_v57 = vadd.f32 %v809_v56, %v637_v15 }
 0x3a5   :  { %864 = vst [vmem:[#allocation11 + $0x18] sm:$0xff] %v856_v50  ;;  %v855_v58 = vadd.f32 %v891_v43, %v840_v57 }
 0x3a7   :  { %863 = vst [vmem:[#allocation11 + $0x10] sm:$0xff] %v855_v58 }
 0x3a8   :  { %v956_v59 = vpop.f32.mrf.mxu1 }
 0x3a9   :  { %v843_v61 = vadd.f32 %v956_v59, %v655_v30 }
 0x3aa   :  { %v819_v62 = vpop.f32.mrf.mxu1 }
 0x3ab   :  { %v858_v63 = vadd.f32 %v891_v43, %v843_v61  ;;  %v842_v0 = vadd.f32 %v819_v62, %v649_v5 }
 0x3ad   :  { %866 = vst [vmem:[#allocation11 + $0x28] sm:$0xff] %v858_v63  ;;  %v857_v2 = vadd.f32 %v891_v43, %v842_v0 }
 0x3af   :  { %865 = vst [vmem:[#allocation11 + $0x20] sm:$0xff] %v857_v2 }
 0x3b0   :  { %v959_v1 = vpop.f32.mrf.mxu1 }
 0x3b1   :  { %v845_v3 = vadd.f32 %v959_v1, %v667_v48 }
 0x3b2   :  { %v829_v4 = vpop.f32.mrf.mxu1 }
 0x3b3   :  { %v860_v6 = vadd.f32 %v891_v43, %v845_v3  ;;  %v844_v7 = vadd.f32 %v829_v4, %v661_v23 }
 0x3b5   :  { %868 = vst [vmem:[#allocation11 + $0x38] sm:$0xff] %v860_v6  ;;  %v859_v8 = vadd.f32 %v891_v43, %v844_v7 }
 0x3b7   :  { %867 = vst [vmem:[#allocation11 + $0x30] sm:$0xff] %v859_v8 }
 0x3b8   :  { %1114 = shalt.err (!%p1111_p1)
}
 0x3b9   :  { %880 = dma.vmem_to_hbm [thread:$0]  %s875_s17, 1024, %s1366_s9, [#allocation4], %s1138_s0, %s1138_s0, %s1139_s11  }
 0x3ba   :  { %1129 = dma.done.wait [#allocation4], 1024  }
 0x3bb   :  { %1130 = vsyncadd [#allocation4], 4294966272 }
 0x3bc   :  { %884 = vsyncpa [#allocation3], 1 }
 0x3bd   :  { %885 = vsyncpa [#allocation6], 1 }
 0x3be   :  { %886 = vsyncpa [#allocation9], 1 }
 0x3bf   :  { %887 = vsyncpa [#allocation4], 1 }

</bundles_post_ra>
